<compile_context>
chip_gen: v7x
topology: tpu7x:2x2x1
jax: 0.10.0
libtpu: 0.0.40
codegen_flags: <defaults>
</compile_context>

<pallas_src>
import functools

import jax
import jax.numpy as jnp
from jax.experimental import pallas as pl
from jax.experimental.pallas import tpu as pltpu


def _round_up(x, m):
    return ((x + m - 1) // m) * m


# ----------------------------------------------------------------------------
# VMEM budget: generation-aware (v7x: 64 MiB/TC, v5e/v6e: 128 MiB); leave
# headroom for Mosaic internal scratch / semaphores.
# ----------------------------------------------------------------------------
@functools.lru_cache(maxsize=1)
def _vmem_limit_bytes():
    try:
        cap = pltpu.get_tpu_info().vmem_capacity_bytes
    except Exception:
        cap = 64 * 1024 * 1024            # conservative (v7x-sized) fallback
    return min(int(cap * 3 // 4), 96 * 1024 * 1024)


def _spec(shape, index_map, buffers=None):
    """BlockSpec with an optional pipeline depth (graceful fallback)."""
    if buffers is None:
        return pl.BlockSpec(shape, index_map)
    try:
        return pl.BlockSpec(shape, index_map, pipeline_mode=pl.Buffered(buffers))
    except (TypeError, AttributeError):   # older JAX without pipeline_mode
        return pl.BlockSpec(shape, index_map)


# ----------------------------------------------------------------------------
# Pallas kernels: fused 1x1-conv-as-matmul (+ optional bias), weight resident
# ----------------------------------------------------------------------------
def _mm_kernel(x_ref, w_ref, o_ref):
    o_ref[...] = jnp.dot(
        x_ref[...], w_ref[...], preferred_element_type=jnp.float32
    ).astype(o_ref.dtype)


def _mm_bias_kernel(x_ref, w_ref, b_ref, o_ref):
    acc = jnp.dot(x_ref[...], w_ref[...], preferred_element_type=jnp.float32)
    o_ref[...] = (acc + b_ref[...]).astype(o_ref.dtype)


def conv1x1_pallas(x2d, weight, bias=None, *, tm=512, out_dtype=jnp.bfloat16,
                   x_buffers=2):
    """1x1 conv as (M,K)@(K,N)+bias.

    bf16 operands, f32 MXU accumulation, out_dtype writeback.  Weight / bias
    use constant index_maps and Buffered(1): DMA'd to VMEM exactly once and
    kept resident (no double buffer).  X streams along M.  tm: 512 on v7x,
    1024 on v5e/v6e at production scale (M there divides evenly -> no pad).
    """
    M, K = x2d.shape
    Kw, N = weight.shape
    assert K == Kw, (K, Kw)
    assert tm % 8 == 0

    x = x2d.astype(jnp.bfloat16)
    w = weight.astype(jnp.bfloat16)

    # Tile only M.  K and N use full-extent blocks (legal even if not 128
    # multiples; Mosaic pads the VMEM layout), so no standalone jnp.pad pass.
    tm_eff = min(tm, _round_up(M, 8))
    Mp = _round_up(M, tm_eff)
    if Mp != M:
        x = jnp.pad(x, ((0, Mp - M), (0, 0)))
    n_steps = Mp // tm_eff
    xb = max(1, min(x_buffers, n_steps))

    in_specs = [
        # X streams tile-by-tile along M.
        _spec((tm_eff, K), lambda i: (i, 0), buffers=xb),
        # Weight: constant index -> loaded once, resident; single buffer.
        _spec((K, N), lambda i: (0, 0), buffers=1),
    ]
    args = [x, w]
    kernel = _mm_kernel
    if bias is not None:
        in_specs.append(_spec((1, N), lambda i: (0, 0), buffers=1))
        args.append(bias.astype(jnp.float32).reshape(1, N))
        kernel = _mm_bias_kernel

    out = pl.pallas_call(
        kernel,
        out_shape=jax.ShapeDtypeStruct((Mp, N), out_dtype),
        grid_spec=pltpu.PrefetchScalarGridSpec(
            num_scalar_prefetch=0,
            grid=(n_steps,),
            in_specs=in_specs,
            out_specs=pl.BlockSpec((tm_eff, N), lambda i: (i, 0)),  # lane-dense
        ),
        compiler_params=pltpu.CompilerParams(
            dimension_semantics=("parallel",),   # shards M across TCs on v7x
            vmem_limit_bytes=_vmem_limit_bytes(),
        ),
    )(*args)
    return out[:M] if Mp != M else out


# ----------------------------------------------------------------------------
# Bilinear resize (PyTorch align_corners=False): 2-tap separable gather+lerp.
# ----------------------------------------------------------------------------
def _interp_taps(in_size, out_size):
    i = jnp.arange(out_size, dtype=jnp.float32)
    src = (i + 0.5) * (in_size / out_size) - 0.5
    src = jnp.maximum(src, 0.0)                       # PyTorch clamps negatives
    i0 = jnp.minimum(jnp.floor(src).astype(jnp.int32), in_size - 1)
    i1 = jnp.minimum(i0 + 1, in_size - 1)
    lam = src - i0.astype(jnp.float32)
    return i0, i1, lam


def bilinear_resize_nhwc(x, out_h, out_w):
    """(B, h, w, C) -> (B, out_h, out_w, C); lerps in f32."""
    _, in_h, in_w, _ = x.shape
    i0, i1, lh = _interp_taps(in_h, out_h)
    j0, j1, lw = _interp_taps(in_w, out_w)
    lh = lh[None, :, None, None]
    lw = lw[None, None, :, None]
    xr = jnp.take(x, i0, axis=1) * (1.0 - lh) + jnp.take(x, i1, axis=1) * lh
    return jnp.take(xr, j0, axis=2) * (1.0 - lw) + jnp.take(xr, j1, axis=2) * lw


# ----------------------------------------------------------------------------
# Module-equivalent forward
# ----------------------------------------------------------------------------
def grood_forward(feature_pyramid, weight, bias, target_hw, *, tm=512):
    """feature_pyramid: list of NCHW arrays; weight (C_in, EMB); bias (EMB,).

    Returns (B*H*W, EMB) float32, equal (up to bf16 matmul rounding) to the
    module's resize -> concat -> conv1x1 -> rearrange.  The conv is applied
    per level at native resolution; this is exact because conv1x1 and the
    bilinear resize are linear and the bilinear weights sum to 1 per pixel.
    """
    th, tw = target_hw
    emb_size = weight.shape[1]
    batch = feature_pyramid[0].shape[0]
    acc = None
    c_off = 0
    for lvl, feat in enumerate(feature_pyramid):
        b, c, h, w = feat.shape
        w_lvl = weight[c_off:c_off + c, :]
        c_off += c
        # NCHW -> (B*h*w, C) in NHWC order (small native-res tensor; the bf16
        # cast inside conv1x1_pallas fuses with this producer under jit).
        x2d = jnp.transpose(feat, (0, 2, 3, 1)).reshape(b * h * w, c)
        # Bias is added exactly once (level 0): resize(y + b) == resize(y) + b
        # since the bilinear weights form a partition of unity.
        y = conv1x1_pallas(x2d, w_lvl, bias if lvl == 0 else None,
                           tm=tm, out_dtype=jnp.bfloat16)
        y = bilinear_resize_nhwc(y.reshape(b, h, w, emb_size), th, tw)
        acc = y if acc is None else acc + y           # f32 accumulation
    assert c_off == weight.shape[0]
    # 'b c h w -> (b h w) c' of the conv output == plain reshape of NHWC.
    return acc.reshape(batch * th * tw, emb_size).astype(jnp.float32)


# ----------------------------------------------------------------------------
# Plain-JAX f32 reference with the module's original structure (for checking)
# ----------------------------------------------------------------------------
def _interp_matrix(in_size, out_size):
    i0, i1, lam = _interp_taps(in_size, out_size)
    rows = jnp.arange(out_size)
    m = jnp.zeros((out_size, in_size), jnp.float32)
    m = m.at[rows, i0].add(1.0 - lam)
    m = m.at[rows, i1].add(lam)
    return m


def reference_forward(feature_pyramid, weight, bias, target_hw):
    th, tw = target_hw
    levels = []
    for feat in feature_pyramid:
        _, _, h, w = feat.shape
        wh = _interp_matrix(h, th)
        ww = _interp_matrix(w, tw)
        levels.append(jnp.einsum("oh,bchw,pw->bopc", wh, feat, ww,
                                 precision="highest"))
    emb = jnp.concatenate(levels, axis=-1)            # (B, th, tw, C_in) NHWC
    b, hh, wd, c_in = emb.shape
    return jnp.matmul(emb.reshape(b * hh * wd, c_in), weight,
                      precision="highest") + bias


if __name__ == "__main__":
    # Small, structure-preserving configuration
    # (scaled from channels 192/384/768/1536, EMB 1536, target 1024x2048).
    PYR_CHANNELS = [4, 8, 16, 32]
    PYR_SPATIAL = [(16, 16), (8, 8), (4, 4), (2, 2)]
    TARGET_HW = (16, 16)
    EMB = 128
    B = 2
    C_IN = sum(PYR_CHANNELS)                          # 60

    key = jax.random.PRNGKey(0)
    keys = jax.random.split(key, len(PYR_CHANNELS) + 2)

    feature_pyramid = [
        jax.random.normal(keys[i], (B, c, h, w), dtype=jnp.float32)
        for i, (c, (h, w)) in enumerate(zip(PYR_CHANNELS, PYR_SPATIAL))
    ]

    # Deterministic Conv2d(60->128, k=1) analogue: uniform(-1/sqrt(fan_in)).
    bound = 1.0 / float(C_IN) ** 0.5
    weight = jax.random.uniform(keys[-2], (C_IN, EMB), jnp.float32, -bound, bound)
    bias = jax.random.uniform(keys[-1], (EMB,), jnp.float32, -bound, bound)

    fwd = jax.jit(functools.partial(grood_forward, target_hw=TARGET_HW))
    out = jax.block_until_ready(fwd(feature_pyramid, weight, bias))

    ref = reference_forward(feature_pyramid, weight, bias, TARGET_HW)

    th, tw = TARGET_HW
    assert out.shape == (B * th * tw, EMB), out.shape
    err = float(jnp.max(jnp.abs(out - ref)))
    assert err < 5e-2, f"max abs err {err}"
    print("KERNEL_OK")
</pallas_src>

<mosaic_0001>
module attributes {stable_mosaic.version = 11 : i64} {
  func.func @_mm_kernel(%arg0: i32, %arg1: memref<32x16xbf16, #tpu.memory_space<vmem>>, %arg2: memref<16x128xbf16, #tpu.memory_space<vmem>>, %arg3: memref<32x128xbf16, #tpu.memory_space<vmem>>) attributes {dimension_semantics = [#tpu.dimension_semantics<parallel>], iteration_bounds = array<i64: 1>, scalar_prefetch = 0 : i64, scratch_operands = 0 : i64, tpu.core_type = #tpu.core_type<tc>, window_params = [{pipeline_mode = #tpu.pipeline_mode<synchronous>, transform_indices = @transform_0, window_bounds = array<i64: 32, 16>}, {pipeline_mode = #tpu.pipeline_mode<synchronous>, transform_indices = @transform_1, window_bounds = array<i64: 16, 128>}, {transform_indices = @transform_2, window_bounds = array<i64: 32, 128>}]} {
    %c0 = arith.constant 0 : index
    %c0_0 = arith.constant 0 : index
    %0 = vector.load %arg1[%c0, %c0_0] : memref<32x16xbf16, #tpu.memory_space<vmem>>, vector<32x16xbf16>
    %c0_1 = arith.constant 0 : index
    %c0_2 = arith.constant 0 : index
    %1 = vector.load %arg2[%c0_1, %c0_2] : memref<16x128xbf16, #tpu.memory_space<vmem>>, vector<16x128xbf16>
    %cst = arith.constant dense<0.000000e+00> : vector<32x128xf32>
    %2 = tpu.matmul %0, %1, %cst {dimension_numbers = #tpu.dot_dimension_numbers<[1], [0], [0], [1], [0, 0, 1, 1], [], []>} : vector<32x16xbf16>, vector<16x128xbf16>, vector<32x128xf32> -> vector<32x128xf32>
    %3 = arith.truncf %2 : vector<32x128xf32> to vector<32x128xbf16>
    %c0_3 = arith.constant 0 : index
    %c0_4 = arith.constant 0 : index
    %4 = vector.load %arg3[%c0_3, %c0_4] : memref<32x128xbf16, #tpu.memory_space<vmem>>, vector<32x128xbf16>
    tpu.vector_store %arg3[%c0_3, %c0_4], %3 {strides = array<i32>} : memref<32x128xbf16, #tpu.memory_space<vmem>>, vector<32x128xbf16>,
    return
  }
  func.func @transform_0(%arg0: i32) -> (i32, i32) {
    %c0_i32 = arith.constant 0 : i32
    %c0_i32_0 = arith.constant 0 : i32
    return %arg0, %c0_i32 : i32, i32
  }
  func.func @transform_1(%arg0: i32) -> (i32, i32) {
    %c0_i32 = arith.constant 0 : i32
    %c0_i32_0 = arith.constant 0 : i32
    %c0_i32_1 = arith.constant 0 : i32
    return %c0_i32, %c0_i32_0 : i32, i32
  }
  func.func @transform_2(%arg0: i32) -> (i32, i32) {
    %c0_i32 = arith.constant 0 : i32
    %c0_i32_0 = arith.constant 0 : i32
    return %arg0, %c0_i32 : i32, i32
  }
}

module attributes {stable_mosaic.version = 11 : i64} {
  func.func @_mm_kernel(%arg0: i32, %arg1: memref<8x32xbf16, #tpu.memory_space<vmem>>, %arg2: memref<32x128xbf16, #tpu.memory_space<vmem>>, %arg3: memref<8x128xbf16, #tpu.memory_space<vmem>>) attributes {dimension_semantics = [#tpu.dimension_semantics<parallel>], iteration_bounds = array<i64: 1>, scalar_prefetch = 0 : i64, scratch_operands = 0 : i64, tpu.core_type = #tpu.core_type<tc>, window_params = [{pipeline_mode = #tpu.pipeline_mode<synchronous>, transform_indices = @transform_0, window_bounds = array<i64: 8, 32>}, {pipeline_mode = #tpu.pipeline_mode<synchronous>, transform_indices = @transform_1, window_bounds = array<i64: 32, 128>}, {transform_indices = @transform_2, window_bounds = array<i64: 8, 128>}]} {
    %c0 = arith.constant 0 : index
    %c0_0 = arith.constant 0 : index
    %0 = vector.load %arg1[%c0, %c0_0] : memref<8x32xbf16, #tpu.memory_space<vmem>>, vector<8x32xbf16>
    %c0_1 = arith.constant 0 : index
    %c0_2 = arith.constant 0 : index
    %1 = vector.load %arg2[%c0_1, %c0_2] : memref<32x128xbf16, #tpu.memory_space<vmem>>, vector<32x128xbf16>
    %cst = arith.constant dense<0.000000e+00> : vector<8x128xf32>
    %2 = tpu.matmul %0, %1, %cst {dimension_numbers = #tpu.dot_dimension_numbers<[1], [0], [0], [1], [0, 0, 1, 1], [], []>} : vector<8x32xbf16>, vector<32x128xbf16>, vector<8x128xf32> -> vector<8x128xf32>
    %3 = arith.truncf %2 : vector<8x128xf32> to vector<8x128xbf16>
    %c0_3 = arith.constant 0 : index
    %c0_4 = arith.constant 0 : index
    %4 = vector.load %arg3[%c0_3, %c0_4] : memref<8x128xbf16, #tpu.memory_space<vmem>>, vector<8x128xbf16>
    tpu.vector_store %arg3[%c0_3, %c0_4], %3 {strides = array<i32>} : memref<8x128xbf16, #tpu.memory_space<vmem>>, vector<8x128xbf16>,
    return
  }
  func.func @transform_0(%arg0: i32) -> (i32, i32) {
    %c0_i32 = arith.constant 0 : i32
    %c0_i32_0 = arith.constant 0 : i32
    return %arg0, %c0_i32 : i32, i32
  }
  func.func @transform_1(%arg0: i32) -> (i32, i32) {
    %c0_i32 = arith.constant 0 : i32
    %c0_i32_0 = arith.constant 0 : i32
    %c0_i32_1 = arith.constant 0 : i32
    return %c0_i32, %c0_i32_0 : i32, i32
  }
  func.func @transform_2(%arg0: i32) -> (i32, i32) {
    %c0_i32 = arith.constant 0 : i32
    %c0_i32_0 = arith.constant 0 : i32
    return %arg0, %c0_i32 : i32, i32
  }
}

module attributes {stable_mosaic.version = 11 : i64} {
  func.func @_mm_kernel(%arg0: i32, %arg1: memref<128x8xbf16, #tpu.memory_space<vmem>>, %arg2: memref<8x128xbf16, #tpu.memory_space<vmem>>, %arg3: memref<128x128xbf16, #tpu.memory_space<vmem>>) attributes {dimension_semantics = [#tpu.dimension_semantics<parallel>], iteration_bounds = array<i64: 1>, scalar_prefetch = 0 : i64, scratch_operands = 0 : i64, tpu.core_type = #tpu.core_type<tc>, window_params = [{pipeline_mode = #tpu.pipeline_mode<synchronous>, transform_indices = @transform_0, window_bounds = array<i64: 128, 8>}, {pipeline_mode = #tpu.pipeline_mode<synchronous>, transform_indices = @transform_1, window_bounds = array<i64: 8, 128>}, {transform_indices = @transform_2, window_bounds = array<i64: 128, 128>}]} {
    %c0 = arith.constant 0 : index
    %c0_0 = arith.constant 0 : index
    %0 = vector.load %arg1[%c0, %c0_0] : memref<128x8xbf16, #tpu.memory_space<vmem>>, vector<128x8xbf16>
    %c0_1 = arith.constant 0 : index
    %c0_2 = arith.constant 0 : index
    %1 = vector.load %arg2[%c0_1, %c0_2] : memref<8x128xbf16, #tpu.memory_space<vmem>>, vector<8x128xbf16>
    %cst = arith.constant dense<0.000000e+00> : vector<128x128xf32>
    %2 = tpu.matmul %0, %1, %cst {dimension_numbers = #tpu.dot_dimension_numbers<[1], [0], [0], [1], [0, 0, 1, 1], [], []>} : vector<128x8xbf16>, vector<8x128xbf16>, vector<128x128xf32> -> vector<128x128xf32>
    %3 = arith.truncf %2 : vector<128x128xf32> to vector<128x128xbf16>
    %c0_3 = arith.constant 0 : index
    %c0_4 = arith.constant 0 : index
    %4 = vector.load %arg3[%c0_3, %c0_4] : memref<128x128xbf16, #tpu.memory_space<vmem>>, vector<128x128xbf16>
    tpu.vector_store %arg3[%c0_3, %c0_4], %3 {strides = array<i32>} : memref<128x128xbf16, #tpu.memory_space<vmem>>, vector<128x128xbf16>,
    return
  }
  func.func @transform_0(%arg0: i32) -> (i32, i32) {
    %c0_i32 = arith.constant 0 : i32
    %c0_i32_0 = arith.constant 0 : i32
    return %arg0, %c0_i32 : i32, i32
  }
  func.func @transform_1(%arg0: i32) -> (i32, i32) {
    %c0_i32 = arith.constant 0 : i32
    %c0_i32_0 = arith.constant 0 : i32
    %c0_i32_1 = arith.constant 0 : i32
    return %c0_i32, %c0_i32_0 : i32, i32
  }
  func.func @transform_2(%arg0: i32) -> (i32, i32) {
    %c0_i32 = arith.constant 0 : i32
    %c0_i32_0 = arith.constant 0 : i32
    return %arg0, %c0_i32 : i32, i32
  }
}

module attributes {stable_mosaic.version = 11 : i64} {
  func.func @_mm_bias_kernel(%arg0: i32, %arg1: memref<512x4xbf16, #tpu.memory_space<vmem>>, %arg2: memref<4x128xbf16, #tpu.memory_space<vmem>>, %arg3: memref<1x128xf32, #tpu.memory_space<vmem>>, %arg4: memref<512x128xbf16, #tpu.memory_space<vmem>>) attributes {dimension_semantics = [#tpu.dimension_semantics<parallel>], iteration_bounds = array<i64: 1>, scalar_prefetch = 0 : i64, scratch_operands = 0 : i64, tpu.core_type = #tpu.core_type<tc>, window_params = [{pipeline_mode = #tpu.pipeline_mode<synchronous>, transform_indices = @transform_0, window_bounds = array<i64: 512, 4>}, {pipeline_mode = #tpu.pipeline_mode<synchronous>, transform_indices = @transform_1, window_bounds = array<i64: 4, 128>}, {pipeline_mode = #tpu.pipeline_mode<synchronous>, transform_indices = @transform_2, window_bounds = array<i64: 1, 128>}, {transform_indices = @transform_3, window_bounds = array<i64: 512, 128>}]} {
    %c0 = arith.constant 0 : index
    %c0_0 = arith.constant 0 : index
    %0 = vector.load %arg1[%c0, %c0_0] : memref<512x4xbf16, #tpu.memory_space<vmem>>, vector<512x4xbf16>
    %c0_1 = arith.constant 0 : index
    %c0_2 = arith.constant 0 : index
    %1 = vector.load %arg2[%c0_1, %c0_2] : memref<4x128xbf16, #tpu.memory_space<vmem>>, vector<4x128xbf16>
    %cst = arith.constant dense<0.000000e+00> : vector<512x128xf32>
    %2 = tpu.matmul %0, %1, %cst {dimension_numbers = #tpu.dot_dimension_numbers<[1], [0], [0], [1], [0, 0, 1, 1], [], []>} : vector<512x4xbf16>, vector<4x128xbf16>, vector<512x128xf32> -> vector<512x128xf32>
    %c0_3 = arith.constant 0 : index
    %c0_4 = arith.constant 0 : index
    %3 = vector.load %arg3[%c0_3, %c0_4] : memref<1x128xf32, #tpu.memory_space<vmem>>, vector<1x128xf32>
    %4 = vector.broadcast %3 : vector<1x128xf32> to vector<512x128xf32>
    %5 = arith.addf %2, %4 : vector<512x128xf32>
    %6 = arith.truncf %5 : vector<512x128xf32> to vector<512x128xbf16>
    %c0_5 = arith.constant 0 : index
    %c0_6 = arith.constant 0 : index
    %7 = vector.load %arg4[%c0_5, %c0_6] : memref<512x128xbf16, #tpu.memory_space<vmem>>, vector<512x128xbf16>
    tpu.vector_store %arg4[%c0_5, %c0_6], %6 {strides = array<i32>} : memref<512x128xbf16, #tpu.memory_space<vmem>>, vector<512x128xbf16>,
    return
  }
  func.func @transform_0(%arg0: i32) -> (i32, i32) {
    %c0_i32 = arith.constant 0 : i32
    %c0_i32_0 = arith.constant 0 : i32
    return %arg0, %c0_i32 : i32, i32
  }
  func.func @transform_1(%arg0: i32) -> (i32, i32) {
    %c0_i32 = arith.constant 0 : i32
    %c0_i32_0 = arith.constant 0 : i32
    %c0_i32_1 = arith.constant 0 : i32
    return %c0_i32, %c0_i32_0 : i32, i32
  }
  func.func @transform_2(%arg0: i32) -> (i32, i32) {
    %c0_i32 = arith.constant 0 : i32
    %c0_i32_0 = arith.constant 0 : i32
    %c0_i32_1 = arith.constant 0 : i32
    return %c0_i32, %c0_i32_0 : i32, i32
  }
  func.func @transform_3(%arg0: i32) -> (i32, i32) {
    %c0_i32 = arith.constant 0 : i32
    %c0_i32_0 = arith.constant 0 : i32
    return %arg0, %c0_i32 : i32, i32
  }
}

</mosaic_0001>

<bundles_post_ra>
// kernel: grood_forward.6
= control target key start
LH: loop header
LB: loop body
LE: loop exit
PB: predicated region body
PF: predicated region fallthrough
CT: control target
= control target key end

     0   :  { %vm34_vm0 = vcmask 130048   ;;  %s180_s1 = inlined_call_operand.vmem [shape: bf16[16,128], index: 1, kind: input, shape index: {}]   ;;  %s181_s0 = inlined_call_operand.vmem [shape: bf16[32,16], index: 0, kind: input, shape index: {}]   ;;  %s182_s2 = inlined_call_operand.vmem [shape: bf16[32,128], index: 2, kind: output, shape index: {}]  }
   0x1   :  { %v147_v0 = vld [vmem:[%s180_s1] sm:$0xff]   ;;  %v149_v2 = vld [vmem:[%s181_s0 + $0x8] sm:$0xff]  }
   0x2   :  { %v148_v1 = vld [vmem:[%s181_s0] sm:$0xff]   ;;  %141 = vmatprep.subr.bf16.mxu0 %v147_v0 }
   0x3   :  { %142 = vmatpush3.bf16.msra.mxu0 %v147_v0  ;;  %143 = vmatprep.mubr.msk.bf16.mxu0 %vm34_vm0, %v148_v1 }
   0x6   :  { %144 = vmatmul.mubr.msk.bf16.vlgmr.msra.gmra.mrb[0].mxu0 %vm34_vm0, %v149_v2 }
  0xd9   :  { %v145_v3 = vpop.f32.mrb[0].mxu0 }
  0xda   :  { %v75_v4 = vpop.f32.mrb[1].mxu0 }
  0xdb   :  { %v146_v5 = vpop.f32.mrb[2].mxu0 }
  0xdc   :  { %v135_v6 = vpack.c.bf16 %v146_v5, %v145_v3  ;;  %v78_v7 = vpop.f32.mrb[3].mxu0 }
  0xdd   :  { %v130_v8 = vpack.c.bf16 %v78_v7, %v75_v4 }
  0xde   :  { %137 = vst [vmem:[%s182_s2 + $0x8] sm:$0xff] %v135_v6  }
  0xdf   :  { %131 = vst [vmem:[%s182_s2] sm:$0xff] %v130_v8  }

// kernel: grood_forward.7
= control target key start
LH: loop header
LB: loop body
LE: loop exit
PB: predicated region body
PF: predicated region fallthrough
CT: control target
= control target key end

     0   :  { %v97_v0 = vmov 0.0   ;;  %vm98_vm0 = vmmov 0   ;;  %vm29_vm1 = vcmask 261120   ;;  %s126_s1 = inlined_call_operand.vmem [shape: bf16[32,128], index: 1, kind: input, shape index: {}]   ;;  %s127_s0 = inlined_call_operand.vmem [shape: bf16[8,32], index: 0, kind: input, shape index: {}]   ;;  %s128_s2 = inlined_call_operand.vmem [shape: bf16[8,128], index: 2, kind: output, shape index: {}]  }
   0x1   :  { %85 = vmatprep.subr.bf16.mxu0 %v97_v0  ;;  %v95_v1 = vld [vmem:[%s126_s1] sm:$0xff]   ;;  %89 = vmatprep.mubr.msk.bf16.mxu0 %vm98_vm0, %v97_v0  ;;  %v96_v2 = vld [vmem:[%s126_s1 + $0x8] sm:$0xff]  }
   0x2   :  { %86 = vmatpush3.bf16.msra.mxu0 %v95_v1  ;;  %v12_v3 = vld [vmem:[%s127_s0] sm:$0xf] }
   0x3   :  { %87 = vmatprep.subr.bf16.mxu0 %v97_v0 }
   0x6   :  { %88 = vmatpush3.bf16.msra.mxu0 %v96_v2 }
   0x9   :  { %90 = vmatmul.mubr.msk.bf16.vlgmr.msra.gmra.mrb[0].mxu0 %vm29_vm1, %v12_v3 }
  0xdc   :  { %v67_v4 = vpop.f32.mrb[0].mxu0 }
  0xdd   :  { %v73_v5 = vpack.c.bf16 %v67_v4, %v67_v4  ;;  %v91_v6 = vpop.f32.mrb[1].mxu0 }
  0xde   :  { %v70_v7 = vpop.f32.mrb[2].mxu0 }
  0xdf   :  { %74 = vst [vmem:[%s128_s2] sm:$0xf] %v73_v5  ;;  %v92_v8 = vpop.f32.mrb[3].mxu0 }

// kernel: grood_forward.5
= control target key start
LH: loop header
LB: loop body
LE: loop exit
PB: predicated region body
PF: predicated region fallthrough
CT: control target
= control target key end

     0   :  { %vm94_vm0 = vcmask 1043456   ;;  %vm69_vm1 = vcmask 64512   ;;  %s487_s1 = inlined_call_operand.vmem [shape: bf16[8,128], index: 1, kind: input, shape index: {}]   ;;  %s488_s0 = inlined_call_operand.vmem [shape: bf16[128,8], index: 0, kind: input, shape index: {}]   ;;  %s489_s2 = inlined_call_operand.vmem [shape: bf16[128,128], index: 2, kind: output, shape index: {}]  }
   0x1   :  { %v28_v0 = vld [vmem:[%s487_s1] sm:$0xf]  ;;  %v407_v4 = vld [vmem:[%s488_s0 + $0x8] sm:$0xff]   ;;  %v409_v6 = vld [vmem:[%s488_s0 + $0x10] sm:$0xff]  }
   0x2   :  { %403 = vmatprep.subr.msk.bf16.mxu0 %vm94_vm0, %v28_v0  ;;  %404 = vmatprep.subr.msk.bf16.mxu1 %vm94_vm0, %v28_v0  ;;  %v96_v1 = vsel %vm94_vm0, %v28_v0, 0  ;;  %v405_v2 = vld [vmem:[%s488_s0] sm:$0xff]   ;;  %v408_v5 = vld [vmem:[%s488_s0 + $0x28] sm:$0xff]   ;;  %v410_v7 = vld [vmem:[%s488_s0 + $0x30] sm:$0xff]  }
   0x3   :  { %384 = vmatpush3.bf16.msra.mxu0 %v96_v1  ;;  %402 = vmatpush3.bf16.msra.mxu1 %v96_v1  ;;  %v406_v3 = vld [vmem:[%s488_s0 + $0x20] sm:$0xff]   ;;  %v411_v8 = vld [vmem:[%s488_s0 + $0x18] sm:$0xff]  }
   0x4   :  { %385 = vmatprep.mubr.msk.bf16.mxu0 %vm69_vm1, %v405_v2  ;;  %393 = vmatprep.mubr.msk.bf16.mxu1 %vm69_vm1, %v406_v3  ;;  %v412_v9 = vld [vmem:[%s488_s0 + $0x38] sm:$0xff]  }
   0x6   :  { %386 = vmatmul.mubr.msk.bf16.vlgmr.msra.gmra.mrb[0].mxu0 %vm69_vm1, %v407_v4  ;;  %394 = vmatmul.mubr.msk.bf16.vlgmr.msra.gmra.mrb[0].mxu1 %vm69_vm1, %v408_v5 }
   0x7   :  { %389 = vmatprep.mubr.msk.bf16.mxu0 %vm69_vm1, %v409_v6  ;;  %397 = vmatprep.mubr.msk.bf16.mxu1 %vm69_vm1, %v410_v7 }
   0xe   :  { %390 = vmatmul.mubr.msk.bf16.gmra.mrb[4].mxu0 %vm69_vm1, %v411_v8  ;;  %398 = vmatmul.mubr.msk.bf16.gmra.mrb[4].mxu1 %vm69_vm1, %v412_v9 }
  0xd9   :  { %v387_v10 = vpop.f32.mrb[0].mxu0  ;;  %v395_v11 = vpop.f32.mrb[0].mxu1 }
  0xda   :  { %v132_v12 = vpop.f32.mrb[1].mxu0  ;;  %v164_v13 = vpop.f32.mrb[1].mxu1 }
  0xdb   :  { %v388_v14 = vpop.f32.mrb[2].mxu0  ;;  %v396_v16 = vpop.f32.mrb[2].mxu1 }
  0xdc   :  { %v335_v15 = vpack.c.bf16 %v388_v14, %v387_v10  ;;  %v135_v17 = vpop.f32.mrb[3].mxu0  ;;  %v355_v18 = vpack.c.bf16 %v396_v16, %v395_v11  ;;  %v167_v20 = vpop.f32.mrb[3].mxu1 }
  0xdd   :  { %v330_v19 = vpack.c.bf16 %v135_v17, %v132_v12  ;;  %v350_v21 = vpack.c.bf16 %v167_v20, %v164_v13 }
  0xde   :  { %367 = vst [vmem:[%s489_s2 + $0x8] sm:$0xff] %v335_v15   ;;  %371 = vst [vmem:[%s489_s2 + $0x28] sm:$0xff] %v355_v18  }
  0xdf   :  { %331 = vst [vmem:[%s489_s2] sm:$0xff] %v330_v19   ;;  %370 = vst [vmem:[%s489_s2 + $0x20] sm:$0xff] %v350_v21  }
  0xe1   :  { %v391_v22 = vpop.f32.mrb[4].mxu0  ;;  %v399_v23 = vpop.f32.mrb[4].mxu1 }
  0xe2   :  { %v148_v24 = vpop.f32.mrb[5].mxu0  ;;  %v180_v25 = vpop.f32.mrb[5].mxu1 }
  0xe3   :  { %v392_v26 = vpop.f32.mrb[6].mxu0  ;;  %v400_v28 = vpop.f32.mrb[6].mxu1 }
  0xe4   :  { %v345_v27 = vpack.c.bf16 %v392_v26, %v391_v22  ;;  %v151_v29 = vpop.f32.mrb[7].mxu0  ;;  %v365_v30 = vpack.c.bf16 %v400_v28, %v399_v23  ;;  %v183_v32 = vpop.f32.mrb[7].mxu1 }
  0xe5   :  { %v340_v31 = vpack.c.bf16 %v151_v29, %v148_v24  ;;  %v360_v33 = vpack.c.bf16 %v183_v32, %v180_v25 }
  0xe6   :  { %369 = vst [vmem:[%s489_s2 + $0x18] sm:$0xff] %v345_v27   ;;  %373 = vst [vmem:[%s489_s2 + $0x38] sm:$0xff] %v365_v30  }
  0xe7   :  { %368 = vst [vmem:[%s489_s2 + $0x10] sm:$0xff] %v340_v31   ;;  %372 = vst [vmem:[%s489_s2 + $0x30] sm:$0xff] %v360_v33  }

// kernel: grood_forward.4
= control target key start
LH: loop header
LB: loop body
LE: loop exit
PB: predicated region body
PF: predicated region fallthrough
CT: control target
= control target key end

     0   :  { %vm344_vm0 = vcmask 1041408   ;;  %vm247_vm1 = vcmask 31744   ;;  %s1796_s1 = inlined_call_operand.vmem [shape: bf16[4,128], index: 1, kind: input, shape index: {}]   ;;  %s1797_s0 = inlined_call_operand.vmem [shape: bf16[512,4], index: 0, kind: input, shape index: {}]   ;;  %s1798_s2 = inlined_call_operand.vmem [shape: f32[1,128], index: 2, kind: input, shape index: {}]   ;;  %s1799_s3 = inlined_call_operand.vmem [shape: bf16[512,128], index: 3, kind: output, shape index: {}]  }
   0x1   :  { %v79_v0 = vld [vmem:[%s1796_s1] sm:$0x3]  ;;  %v1450_v4 = vld [vmem:[%s1797_s0 + $0x8] sm:$0xff]   ;;  %v1452_v6 = vld [vmem:[%s1797_s0 + $0x10] sm:$0xff]  }
   0x2   :  { %1446 = vmatprep.subr.msk.bf16.mxu0 %vm344_vm0, %v79_v0  ;;  %1447 = vmatprep.subr.msk.bf16.mxu1 %vm344_vm0, %v79_v0  ;;  %v346_v1 = vsel %vm344_vm0, %v79_v0, 0  ;;  %v1448_v2 = vld [vmem:[%s1797_s0] sm:$0xff]   ;;  %v1451_v5 = vld [vmem:[%s1797_s0 + $0x88] sm:$0xff]   ;;  %v1453_v7 = vld [vmem:[%s1797_s0 + $0x90] sm:$0xff]  }
   0x3   :  { %1379 = vmatpush3.bf16.msra.mxu0 %v346_v1  ;;  %1445 = vmatpush3.bf16.msra.mxu1 %v346_v1  ;;  %v1449_v3 = vld [vmem:[%s1797_s0 + $0x80] sm:$0xff]   ;;  %v1454_v8 = vld [vmem:[%s1797_s0 + $0x18] sm:$0xff]   ;;  %v1458_v12 = vld [vmem:[%s1797_s0 + $0x28] sm:$0xff]  }
   0x4   :  { %1380 = vmatprep.mubr.msk.bf16.mxu0 %vm247_vm1, %v1448_v2  ;;  %1412 = vmatprep.mubr.msk.bf16.mxu1 %vm247_vm1, %v1449_v3  ;;  %v1455_v9 = vld [vmem:[%s1797_s0 + $0x98] sm:$0xff]   ;;  %v1456_v10 = vld [vmem:[%s1797_s0 + $0x20] sm:$0xff]   ;;  %v1459_v13 = vld [vmem:[%s1797_s0 + $0xa8] sm:$0xff]  }
   0x5   :  { %v1457_v11 = vld [vmem:[%s1797_s0 + $0xa0] sm:$0xff]   ;;  %v1460_v14 = vld [vmem:[%s1797_s0 + $0x30] sm:$0xff]   ;;  %v1462_v16 = vld [vmem:[%s1797_s0 + $0x38] sm:$0xff]  }
   0x6   :  { %1381 = vmatmul.mubr.msk.bf16.vlgmr.msra.gmra.mrb[0].mxu0 %vm247_vm1, %v1450_v4  ;;  %1413 = vmatmul.mubr.msk.bf16.vlgmr.msra.gmra.mrb[0].mxu1 %vm247_vm1, %v1451_v5  ;;  %v1461_v15 = vld [vmem:[%s1797_s0 + $0xb0] sm:$0xff]   ;;  %v1463_v17 = vld [vmem:[%s1797_s0 + $0xb8] sm:$0xff]   ;;  %v1464_v18 = vld [vmem:[%s1797_s0 + $0x40] sm:$0xff]  }
   0x7   :  { %1384 = vmatprep.mubr.msk.bf16.mxu0 %vm247_vm1, %v1452_v6  ;;  %1416 = vmatprep.mubr.msk.bf16.mxu1 %vm247_vm1, %v1453_v7  ;;  %v1465_v19 = vld [vmem:[%s1797_s0 + $0xc0] sm:$0xff]   ;;  %v1466_v20 = vld [vmem:[%s1797_s0 + $0x48] sm:$0xff]   ;;  %v1468_v22 = vld [vmem:[%s1797_s0 + $0x50] sm:$0xff]  }
   0x8   :  { %v1467_v21 = vld [vmem:[%s1797_s0 + $0xc8] sm:$0xff]   ;;  %v1469_v23 = vld [vmem:[%s1797_s0 + $0xd0] sm:$0xff]   ;;  %v1470_v24 = vld [vmem:[%s1797_s0 + $0x58] sm:$0xff]  }
   0x9   :  { %v1471_v25 = vld [vmem:[%s1797_s0 + $0xd8] sm:$0xff]   ;;  %v1472_v26 = vld [vmem:[%s1797_s0 + $0x60] sm:$0xff]   ;;  %v1474_v28 = vld [vmem:[%s1797_s0 + $0x68] sm:$0xff]  }
   0xa   :  { %v1473_v27 = vld [vmem:[%s1797_s0 + $0xe0] sm:$0xff]   ;;  %v1475_v29 = vld [vmem:[%s1797_s0 + $0xe8] sm:$0xff]   ;;  %v1476_v30 = vld [vmem:[%s1797_s0 + $0x70] sm:$0xff]  }
   0xb   :  { %v1477_v31 = vld [vmem:[%s1797_s0 + $0xf0] sm:$0xff]   ;;  %v1478_v32 = vld [vmem:[%s1797_s0 + $0x78] sm:$0xff]   ;;  %v1634_v35 = vld [vmem:[%s1798_s2] ss:$0 sm:$0xff] }
   0xc   :  { %v1479_v33 = vld [vmem:[%s1797_s0 + $0xf8] sm:$0xff]  }
   0xe   :  { %1385 = vmatmul.mubr.msk.bf16.gmra.mrb[4].mxu0 %vm247_vm1, %v1454_v8  ;;  %1417 = vmatmul.mubr.msk.bf16.gmra.mrb[4].mxu1 %vm247_vm1, %v1455_v9 }
   0xf   :  { %1388 = vmatprep.mubr.msk.bf16.mxu0 %vm247_vm1, %v1456_v10  ;;  %1420 = vmatprep.mubr.msk.bf16.mxu1 %vm247_vm1, %v1457_v11 }
  0x16   :  { %1389 = vmatmul.mubr.msk.bf16.gmra.mrb[8].mxu0 %vm247_vm1, %v1458_v12  ;;  %1421 = vmatmul.mubr.msk.bf16.gmra.mrb[8].mxu1 %vm247_vm1, %v1459_v13 }
  0x17   :  { %1392 = vmatprep.mubr.msk.bf16.mxu0 %vm247_vm1, %v1460_v14  ;;  %1424 = vmatprep.mubr.msk.bf16.mxu1 %vm247_vm1, %v1461_v15 }
  0x1e   :  { %1393 = vmatmul.mubr.msk.bf16.gmra.mrb[12].mxu0 %vm247_vm1, %v1462_v16  ;;  %1425 = vmatmul.mubr.msk.bf16.gmra.mrb[12].mxu1 %vm247_vm1, %v1463_v17 }
  0x1f   :  { %1396 = vmatprep.mubr.msk.bf16.mxu0 %vm247_vm1, %v1464_v18  ;;  %1428 = vmatprep.mubr.msk.bf16.mxu1 %vm247_vm1, %v1465_v19 }
  0x26   :  { %1397 = vmatmul.mubr.msk.bf16.gmra.mrb[16].mxu0 %vm247_vm1, %v1466_v20  ;;  %1429 = vmatmul.mubr.msk.bf16.gmra.mrb[16].mxu1 %vm247_vm1, %v1467_v21 }
  0x27   :  { %1400 = vmatprep.mubr.msk.bf16.mxu0 %vm247_vm1, %v1468_v22  ;;  %1432 = vmatprep.mubr.msk.bf16.mxu1 %vm247_vm1, %v1469_v23 }
  0x2e   :  { %1401 = vmatmul.mubr.msk.bf16.gmra.mrb[20].mxu0 %vm247_vm1, %v1470_v24  ;;  %1433 = vmatmul.mubr.msk.bf16.gmra.mrb[20].mxu1 %vm247_vm1, %v1471_v25 }
  0x2f   :  { %1404 = vmatprep.mubr.msk.bf16.mxu0 %vm247_vm1, %v1472_v26  ;;  %1436 = vmatprep.mubr.msk.bf16.mxu1 %vm247_vm1, %v1473_v27 }
  0x36   :  { %1405 = vmatmul.mubr.msk.bf16.gmra.mrb[24].mxu0 %vm247_vm1, %v1474_v28  ;;  %1437 = vmatmul.mubr.msk.bf16.gmra.mrb[24].mxu1 %vm247_vm1, %v1475_v29 }
  0x37   :  { %1408 = vmatprep.mubr.msk.bf16.mxu0 %vm247_vm1, %v1476_v30  ;;  %1440 = vmatprep.mubr.msk.bf16.mxu1 %vm247_vm1, %v1477_v31 }
  0x3e   :  { %1409 = vmatmul.mubr.msk.bf16.gmra.mrb[28].mxu0 %vm247_vm1, %v1478_v32  ;;  %1441 = vmatmul.mubr.msk.bf16.gmra.mrb[28].mxu1 %vm247_vm1, %v1479_v33 }
  0xd9   :  { %v1382_v34 = vpop.f32.mrb[0].mxu0  ;;  %v1414_v36 = vpop.f32.mrb[0].mxu1 }
  0xda   :  { %v382_v37 = vpop.f32.mrb[1].mxu0  ;;  %v510_v38 = vpop.f32.mrb[1].mxu1  ;;  %v391_v40 = vadd.f32 %v1382_v34, %v1634_v35  ;;  %v519_v44 = vadd.f32 %v1414_v36, %v1634_v35 }
  0xdb   :  { %v1383_v39 = vpop.f32.mrb[2].mxu0  ;;  %v1415_v42 = vpop.f32.mrb[2].mxu1  ;;  %v383_v45 = vadd.f32 %v1634_v35, %v382_v37  ;;  %v511_v49 = vadd.f32 %v1634_v35, %v510_v38 }
  0xdc   :  { %v394_v41 = vadd.f32 %v1383_v39, %v1634_v35  ;;  %v385_v43 = vpop.f32.mrb[3].mxu0  ;;  %v522_v46 = vadd.f32 %v1415_v42, %v1634_v35  ;;  %v513_v48 = vpop.f32.mrb[3].mxu1 }
  0xdd   :  { %v386_v47 = vadd.f32 %v1634_v35, %v385_v43  ;;  %v514_v51 = vadd.f32 %v1634_v35, %v513_v48 }
  0xde   :  { %v1162_v50 = vpack.c.bf16 %v394_v41, %v391_v40  ;;  %v1242_v52 = vpack.c.bf16 %v522_v46, %v519_v44 }
  0xdf   :  { %v1157_v53 = vpack.c.bf16 %v386_v47, %v383_v45  ;;  %v1237_v54 = vpack.c.bf16 %v514_v51, %v511_v49 }
  0xe0   :  { %1314 = vst [vmem:[%s1799_s3 + $0x8] sm:$0xff] %v1162_v50   ;;  %1330 = vst [vmem:[%s1799_s3 + $0x88] sm:$0xff] %v1242_v52  }
  0xe1   :  { %1158 = vst [vmem:[%s1799_s3] sm:$0xff] %v1157_v53   ;;  %v1386_v55 = vpop.f32.mrb[4].mxu0  ;;  %1329 = vst [vmem:[%s1799_s3 + $0x80] sm:$0xff] %v1237_v54   ;;  %v1418_v56 = vpop.f32.mrb[4].mxu1 }
  0xe2   :  { %v398_v57 = vpop.f32.mrb[5].mxu0  ;;  %v526_v58 = vpop.f32.mrb[5].mxu1  ;;  %v407_v60 = vadd.f32 %v1386_v55, %v1634_v35  ;;  %v535_v0 = vadd.f32 %v1418_v56, %v1634_v35 }
  0xe3   :  { %v1387_v59 = vpop.f32.mrb[6].mxu0  ;;  %v1419_v62 = vpop.f32.mrb[6].mxu1  ;;  %v399_v1 = vadd.f32 %v1634_v35, %v398_v57  ;;  %v527_v5 = vadd.f32 %v1634_v35, %v526_v58 }
  0xe4   :  { %v410_v61 = vadd.f32 %v1387_v59, %v1634_v35  ;;  %v401_v63 = vpop.f32.mrb[7].mxu0  ;;  %v538_v2 = vadd.f32 %v1419_v62, %v1634_v35  ;;  %v529_v4 = vpop.f32.mrb[7].mxu1 }
  0xe5   :  { %v402_v3 = vadd.f32 %v1634_v35, %v401_v63  ;;  %v530_v7 = vadd.f32 %v1634_v35, %v529_v4 }
  0xe6   :  { %v1172_v6 = vpack.c.bf16 %v410_v61, %v407_v60  ;;  %v1252_v8 = vpack.c.bf16 %v538_v2, %v535_v0 }
  0xe7   :  { %v1167_v9 = vpack.c.bf16 %v402_v3, %v399_v1  ;;  %v1247_v10 = vpack.c.bf16 %v530_v7, %v527_v5 }
  0xe8   :  { %1316 = vst [vmem:[%s1799_s3 + $0x18] sm:$0xff] %v1172_v6   ;;  %1332 = vst [vmem:[%s1799_s3 + $0x98] sm:$0xff] %v1252_v8  }
  0xe9   :  { %1315 = vst [vmem:[%s1799_s3 + $0x10] sm:$0xff] %v1167_v9   ;;  %v1390_v11 = vpop.f32.mrb[8].mxu0  ;;  %1331 = vst [vmem:[%s1799_s3 + $0x90] sm:$0xff] %v1247_v10   ;;  %v1422_v12 = vpop.f32.mrb[8].mxu1 }
  0xea   :  { %v414_v13 = vpop.f32.mrb[9].mxu0  ;;  %v542_v14 = vpop.f32.mrb[9].mxu1  ;;  %v423_v16 = vadd.f32 %v1390_v11, %v1634_v35  ;;  %v551_v20 = vadd.f32 %v1422_v12, %v1634_v35 }
  0xeb   :  { %v1391_v15 = vpop.f32.mrb[10].mxu0  ;;  %v1423_v18 = vpop.f32.mrb[10].mxu1  ;;  %v415_v21 = vadd.f32 %v1634_v35, %v414_v13  ;;  %v543_v25 = vadd.f32 %v1634_v35, %v542_v14 }
  0xec   :  { %v426_v17 = vadd.f32 %v1391_v15, %v1634_v35  ;;  %v417_v19 = vpop.f32.mrb[11].mxu0  ;;  %v554_v22 = vadd.f32 %v1423_v18, %v1634_v35  ;;  %v545_v24 = vpop.f32.mrb[11].mxu1 }
  0xed   :  { %v418_v23 = vadd.f32 %v1634_v35, %v417_v19  ;;  %v546_v27 = vadd.f32 %v1634_v35, %v545_v24 }
  0xee   :  { %v1182_v26 = vpack.c.bf16 %v426_v17, %v423_v16  ;;  %v1262_v28 = vpack.c.bf16 %v554_v22, %v551_v20 }
  0xef   :  { %v1177_v29 = vpack.c.bf16 %v418_v23, %v415_v21  ;;  %v1257_v30 = vpack.c.bf16 %v546_v27, %v543_v25 }
  0xf0   :  { %1318 = vst [vmem:[%s1799_s3 + $0x28] sm:$0xff] %v1182_v26   ;;  %1334 = vst [vmem:[%s1799_s3 + $0xa8] sm:$0xff] %v1262_v28  }
  0xf1   :  { %1317 = vst [vmem:[%s1799_s3 + $0x20] sm:$0xff] %v1177_v29   ;;  %v1394_v31 = vpop.f32.mrb[12].mxu0  ;;  %1333 = vst [vmem:[%s1799_s3 + $0xa0] sm:$0xff] %v1257_v30   ;;  %v1426_v32 = vpop.f32.mrb[12].mxu1 }
  0xf2   :  { %v430_v33 = vpop.f32.mrb[13].mxu0  ;;  %v558_v34 = vpop.f32.mrb[13].mxu1  ;;  %v439_v37 = vadd.f32 %v1394_v31, %v1634_v35  ;;  %v567_v41 = vadd.f32 %v1426_v32, %v1634_v35 }
  0xf3   :  { %v1395_v36 = vpop.f32.mrb[14].mxu0  ;;  %v1427_v39 = vpop.f32.mrb[14].mxu1  ;;  %v431_v42 = vadd.f32 %v1634_v35, %v430_v33  ;;  %v559_v46 = vadd.f32 %v1634_v35, %v558_v34 }
  0xf4   :  { %v442_v38 = vadd.f32 %v1395_v36, %v1634_v35  ;;  %v433_v40 = vpop.f32.mrb[15].mxu0  ;;  %v570_v43 = vadd.f32 %v1427_v39, %v1634_v35  ;;  %v561_v45 = vpop.f32.mrb[15].mxu1 }
  0xf5   :  { %v434_v44 = vadd.f32 %v1634_v35, %v433_v40  ;;  %v562_v48 = vadd.f32 %v1634_v35, %v561_v45 }
  0xf6   :  { %v1192_v47 = vpack.c.bf16 %v442_v38, %v439_v37  ;;  %v1272_v49 = vpack.c.bf16 %v570_v43, %v567_v41 }
  0xf7   :  { %v1187_v50 = vpack.c.bf16 %v434_v44, %v431_v42  ;;  %v1267_v51 = vpack.c.bf16 %v562_v48, %v559_v46 }
  0xf8   :  { %1320 = vst [vmem:[%s1799_s3 + $0x38] sm:$0xff] %v1192_v47   ;;  %1336 = vst [vmem:[%s1799_s3 + $0xb8] sm:$0xff] %v1272_v49  }
  0xf9   :  { %1319 = vst [vmem:[%s1799_s3 + $0x30] sm:$0xff] %v1187_v50   ;;  %v1398_v52 = vpop.f32.mrb[16].mxu0  ;;  %1335 = vst [vmem:[%s1799_s3 + $0xb0] sm:$0xff] %v1267_v51   ;;  %v1430_v53 = vpop.f32.mrb[16].mxu1 }
  0xfa   :  { %v446_v54 = vpop.f32.mrb[17].mxu0  ;;  %v574_v55 = vpop.f32.mrb[17].mxu1  ;;  %v455_v57 = vadd.f32 %v1398_v52, %v1634_v35  ;;  %v583_v61 = vadd.f32 %v1430_v53, %v1634_v35 }
  0xfb   :  { %v1399_v56 = vpop.f32.mrb[18].mxu0  ;;  %v1431_v59 = vpop.f32.mrb[18].mxu1  ;;  %v447_v62 = vadd.f32 %v1634_v35, %v446_v54  ;;  %v575_v2 = vadd.f32 %v1634_v35, %v574_v55 }
  0xfc   :  { %v458_v58 = vadd.f32 %v1399_v56, %v1634_v35  ;;  %v449_v60 = vpop.f32.mrb[19].mxu0  ;;  %v586_v63 = vadd.f32 %v1431_v59, %v1634_v35  ;;  %v577_v1 = vpop.f32.mrb[19].mxu1 }
  0xfd   :  { %v450_v0 = vadd.f32 %v1634_v35, %v449_v60  ;;  %v578_v4 = vadd.f32 %v1634_v35, %v577_v1 }
  0xfe   :  { %v1202_v3 = vpack.c.bf16 %v458_v58, %v455_v57  ;;  %v1282_v5 = vpack.c.bf16 %v586_v63, %v583_v61 }
  0xff   :  { %v1197_v6 = vpack.c.bf16 %v450_v0, %v447_v62  ;;  %v1277_v7 = vpack.c.bf16 %v578_v4, %v575_v2 }
 0x100   :  { %1322 = vst [vmem:[%s1799_s3 + $0x48] sm:$0xff] %v1202_v3   ;;  %1338 = vst [vmem:[%s1799_s3 + $0xc8] sm:$0xff] %v1282_v5  }
 0x101   :  { %1321 = vst [vmem:[%s1799_s3 + $0x40] sm:$0xff] %v1197_v6   ;;  %v1402_v8 = vpop.f32.mrb[20].mxu0  ;;  %1337 = vst [vmem:[%s1799_s3 + $0xc0] sm:$0xff] %v1277_v7   ;;  %v1434_v9 = vpop.f32.mrb[20].mxu1 }
 0x102   :  { %v462_v10 = vpop.f32.mrb[21].mxu0  ;;  %v590_v11 = vpop.f32.mrb[21].mxu1  ;;  %v471_v13 = vadd.f32 %v1402_v8, %v1634_v35  ;;  %v599_v17 = vadd.f32 %v1434_v9, %v1634_v35 }
 0x103   :  { %v1403_v12 = vpop.f32.mrb[22].mxu0  ;;  %v1435_v15 = vpop.f32.mrb[22].mxu1  ;;  %v463_v18 = vadd.f32 %v1634_v35, %v462_v10  ;;  %v591_v22 = vadd.f32 %v1634_v35, %v590_v11 }
 0x104   :  { %v474_v14 = vadd.f32 %v1403_v12, %v1634_v35  ;;  %v465_v16 = vpop.f32.mrb[23].mxu0  ;;  %v602_v19 = vadd.f32 %v1435_v15, %v1634_v35  ;;  %v593_v21 = vpop.f32.mrb[23].mxu1 }
 0x105   :  { %v466_v20 = vadd.f32 %v1634_v35, %v465_v16  ;;  %v594_v24 = vadd.f32 %v1634_v35, %v593_v21 }
 0x106   :  { %v1212_v23 = vpack.c.bf16 %v474_v14, %v471_v13  ;;  %v1292_v25 = vpack.c.bf16 %v602_v19, %v599_v17 }
 0x107   :  { %v1207_v26 = vpack.c.bf16 %v466_v20, %v463_v18  ;;  %v1287_v27 = vpack.c.bf16 %v594_v24, %v591_v22 }
 0x108   :  { %1324 = vst [vmem:[%s1799_s3 + $0x58] sm:$0xff] %v1212_v23   ;;  %1340 = vst [vmem:[%s1799_s3 + $0xd8] sm:$0xff] %v1292_v25  }
 0x109   :  { %1323 = vst [vmem:[%s1799_s3 + $0x50] sm:$0xff] %v1207_v26   ;;  %v1406_v28 = vpop.f32.mrb[24].mxu0  ;;  %1339 = vst [vmem:[%s1799_s3 + $0xd0] sm:$0xff] %v1287_v27   ;;  %v1438_v29 = vpop.f32.mrb[24].mxu1 }
 0x10a   :  { %v478_v30 = vpop.f32.mrb[25].mxu0  ;;  %v606_v31 = vpop.f32.mrb[25].mxu1  ;;  %v487_v33 = vadd.f32 %v1406_v28, %v1634_v35  ;;  %v615_v38 = vadd.f32 %v1438_v29, %v1634_v35 }
 0x10b   :  { %v1407_v32 = vpop.f32.mrb[26].mxu0  ;;  %v1439_v36 = vpop.f32.mrb[26].mxu1  ;;  %v479_v39 = vadd.f32 %v1634_v35, %v478_v30  ;;  %v607_v43 = vadd.f32 %v1634_v35, %v606_v31 }
 0x10c   :  { %v490_v34 = vadd.f32 %v1407_v32, %v1634_v35  ;;  %v481_v37 = vpop.f32.mrb[27].mxu0  ;;  %v618_v40 = vadd.f32 %v1439_v36, %v1634_v35  ;;  %v609_v42 = vpop.f32.mrb[27].mxu1 }
 0x10d   :  { %v482_v41 = vadd.f32 %v1634_v35, %v481_v37  ;;  %v610_v45 = vadd.f32 %v1634_v35, %v609_v42 }
 0x10e   :  { %v1222_v44 = vpack.c.bf16 %v490_v34, %v487_v33  ;;  %v1302_v46 = vpack.c.bf16 %v618_v40, %v615_v38 }
 0x10f   :  { %v1217_v47 = vpack.c.bf16 %v482_v41, %v479_v39  ;;  %v1297_v48 = vpack.c.bf16 %v610_v45, %v607_v43 }
 0x110   :  { %1326 = vst [vmem:[%s1799_s3 + $0x68] sm:$0xff] %v1222_v44   ;;  %1342 = vst [vmem:[%s1799_s3 + $0xe8] sm:$0xff] %v1302_v46  }
 0x111   :  { %1325 = vst [vmem:[%s1799_s3 + $0x60] sm:$0xff] %v1217_v47   ;;  %v1410_v49 = vpop.f32.mrb[28].mxu0  ;;  %1341 = vst [vmem:[%s1799_s3 + $0xe0] sm:$0xff] %v1297_v48   ;;  %v1442_v50 = vpop.f32.mrb[28].mxu1 }
 0x112   :  { %v494_v51 = vpop.f32.mrb[29].mxu0  ;;  %v622_v52 = vpop.f32.mrb[29].mxu1  ;;  %v503_v54 = vadd.f32 %v1410_v49, %v1634_v35  ;;  %v631_v58 = vadd.f32 %v1442_v50, %v1634_v35 }
 0x113   :  { %v1411_v53 = vpop.f32.mrb[30].mxu0  ;;  %v1443_v56 = vpop.f32.mrb[30].mxu1  ;;  %v495_v59 = vadd.f32 %v1634_v35, %v494_v51  ;;  %v623_v63 = vadd.f32 %v1634_v35, %v622_v52 }
 0x114   :  { %v506_v55 = vadd.f32 %v1411_v53, %v1634_v35  ;;  %v497_v57 = vpop.f32.mrb[31].mxu0  ;;  %v634_v60 = vadd.f32 %v1443_v56, %v1634_v35  ;;  %v625_v62 = vpop.f32.mrb[31].mxu1 }
 0x115   :  { %v498_v61 = vadd.f32 %v1634_v35, %v497_v57  ;;  %v626_v1 = vadd.f32 %v1634_v35, %v625_v62 }
 0x116   :  { %v1232_v0 = vpack.c.bf16 %v506_v55, %v503_v54  ;;  %v1312_v2 = vpack.c.bf16 %v634_v60, %v631_v58 }
 0x117   :  { %v1227_v3 = vpack.c.bf16 %v498_v61, %v495_v59  ;;  %v1307_v4 = vpack.c.bf16 %v626_v1, %v623_v63 }
 0x118   :  { %1328 = vst [vmem:[%s1799_s3 + $0x78] sm:$0xff] %v1232_v0   ;;  %1344 = vst [vmem:[%s1799_s3 + $0xf8] sm:$0xff] %v1312_v2  }
 0x119   :  { %1327 = vst [vmem:[%s1799_s3 + $0x70] sm:$0xff] %v1227_v3   ;;  %1343 = vst [vmem:[%s1799_s3 + $0xf0] sm:$0xff] %v1307_v4  }

</bundles_post_ra>
